<compile_context>
chip_gen: v6e
topology: v6e:2x2x1
jax: 0.10.0
libtpu: 0.0.40
codegen_flags: <defaults>
</compile_context>

<pallas_src>
import math
import functools

import jax
import jax.numpy as jnp
from jax.experimental import pallas as pl
from jax.experimental.pallas import tpu as pltpu


def _same_pad_kernel(x_ref, o_ref, *, dst_h, dst_w, src_h, src_w, cp_h, cp_w):
    """Zero only the border strips, then write the interior exactly once.

    All offsets/sizes are static Python ints, so every slice is a static VMEM
    view and the `if` guards are resolved at trace time.
    """
    tile_nc, h_out, w_out = o_ref.shape
    dt = o_ref.dtype

    if cp_h <= 0 or cp_w <= 0:
        # Degenerate fully-cropped case: output is all padding.
        o_ref[...] = jnp.zeros((tile_nc, h_out, w_out), dt)
        return

    # --- border strips (skipped entirely when the corresponding pad is 0) ---
    if dst_h > 0:  # top rows, full width
        o_ref[:, :dst_h, :] = jnp.zeros((tile_nc, dst_h, w_out), dt)
    if dst_h + cp_h < h_out:  # bottom rows, full width
        nb = h_out - (dst_h + cp_h)
        o_ref[:, dst_h + cp_h:, :] = jnp.zeros((tile_nc, nb, w_out), dt)
    if dst_w > 0:  # left columns, middle rows only
        o_ref[:, dst_h:dst_h + cp_h, :dst_w] = jnp.zeros((tile_nc, cp_h, dst_w), dt)
    if dst_w + cp_w < w_out:  # right columns, middle rows only
        nr = w_out - (dst_w + cp_w)
        o_ref[:, dst_h:dst_h + cp_h, dst_w + cp_w:] = jnp.zeros((tile_nc, cp_h, nr), dt)

    # --- interior: single copy of the (possibly cropped) input region ---
    o_ref[:, dst_h:dst_h + cp_h, dst_w:dst_w + cp_w] = (
        x_ref[:, src_h:src_h + cp_h, src_w:src_w + cp_w]
    )


def _same_pad_amounts(H, W, kernel_size, stride):
    """Exact PyTorch-module math (including its H/W naming swap)."""
    in_width = H      # input.size(2)
    in_height = W     # input.size(3)
    out_width = math.ceil(float(in_width) / float(stride))
    out_height = math.ceil(float(in_height) / float(stride))
    pad_along_width = (out_width - 1) * stride + kernel_size - in_width
    pad_along_height = (out_height - 1) * stride + kernel_size - in_height
    pad_left = int(math.floor(pad_along_width / 2))
    pad_right = int(pad_along_width - pad_left)
    pad_top = int(math.floor(pad_along_height / 2))
    pad_bottom = int(pad_along_height - pad_top)
    return pad_left, pad_right, pad_top, pad_bottom


def _pick_tile_nc(nc, plane_block_bytes, budget_bytes, min_grid_steps=4):
    """Largest divisor of `nc` whose block fits the budget and keeps >= a few
    grid steps (so v7x's two TensorCores / the DMA pipeline have work)."""
    by_vmem = max(1, budget_bytes // max(plane_block_bytes, 1))
    by_grid = max(1, nc // min_grid_steps) if nc >= min_grid_steps else nc
    cap = int(min(nc, by_vmem, by_grid))
    for t in range(cap, 0, -1):
        if nc % t == 0:
            return t
    return 1


def same_pad2d(x, kernel_size, stride, *, block_budget_bytes=12 << 20):
    """Pallas implementation of SamePad2d.forward (exact PyTorch semantics)."""
    N, C, H, W = x.shape
    pad_l, pad_r, pad_t, pad_b = _same_pad_amounts(H, W, kernel_size, stride)

    # F.pad: last dim (W) gets (pad_l, pad_r), dim 2 (H) gets (pad_t, pad_b).
    H_out = H + pad_t + pad_b
    W_out = W + pad_l + pad_r
    if H_out <= 0 or W_out <= 0:
        raise ValueError("SamePad2d produced a non-positive output size")

    # Negative pads crop (like F.pad): destination offsets vs. source offsets.
    dst_h, src_h = max(pad_t, 0), max(-pad_t, 0)
    dst_w, src_w = max(pad_l, 0), max(-pad_l, 0)
    cp_h = H + min(pad_t, 0) + min(pad_b, 0)
    cp_w = W + min(pad_l, 0) + min(pad_r, 0)

    NC = N * C
    x_flat = x.reshape(NC, H, W)  # free (contiguous) reshape

    itemsize = jnp.dtype(x.dtype).itemsize
    # Per-plane bytes held in VMEM per grid step (one input + one output block row).
    plane_block_bytes = (H * W + H_out * W_out) * itemsize
    # ~12 MiB of blocks -> ~24 MiB with double-buffering: fits the scoped VMEM
    # of v5e/v6e (after raising the 16 MiB v5e default) and v7x's 32 MiB.
    tile_nc = _pick_tile_nc(NC, plane_block_bytes, block_budget_bytes)
    grid = (NC // tile_nc,)

    block_bytes = tile_nc * plane_block_bytes
    vmem_limit = int(max(2 * block_bytes + (2 << 20), 16 << 20))

    kernel = functools.partial(
        _same_pad_kernel,
        dst_h=dst_h, dst_w=dst_w, src_h=src_h, src_w=src_w, cp_h=cp_h, cp_w=cp_w,
    )

    out_flat = pl.pallas_call(
        kernel,
        out_shape=jax.ShapeDtypeStruct((NC, H_out, W_out), x.dtype),
        grid=grid,
        in_specs=[pl.BlockSpec((tile_nc, H, W), lambda i: (i, 0, 0))],
        out_specs=pl.BlockSpec((tile_nc, H_out, W_out), lambda i: (i, 0, 0)),
        compiler_params=pltpu.CompilerParams(
            dimension_semantics=("parallel",),
            vmem_limit_bytes=vmem_limit,
        ),
    )(x_flat)

    return out_flat.reshape(N, C, H_out, W_out)


def _same_pad2d_ref(x, kernel_size, stride):
    """Plain-JAX reference (non-negative pads only), same module math."""
    _, _, H, W = x.shape
    pad_l, pad_r, pad_t, pad_b = _same_pad_amounts(H, W, kernel_size, stride)
    assert min(pad_l, pad_r, pad_t, pad_b) >= 0
    return jnp.pad(x, ((0, 0), (0, 0), (pad_t, pad_b), (pad_l, pad_r)))


if __name__ == "__main__":
    key = jax.random.PRNGKey(0)
    x = jax.random.normal(key, (2, 4, 16, 16), dtype=jnp.float32)

    # (kernel_size, stride): symmetric pad of 1, and an asymmetric (2, 3) pad.
    for ks, st in ((3, 1), (7, 2)):
        out = jax.block_until_ready(same_pad2d(x, ks, st))
        ref = _same_pad2d_ref(x, ks, st)
        assert out.shape == ref.shape, (ks, st, out.shape, ref.shape)
        assert jnp.array_equal(out, ref), f"mismatch vs reference padding ({ks},{st})"

    print("KERNEL_OK")
</pallas_src>

<mosaic_0001>
module attributes {stable_mosaic.version = 11 : i64} {
  func.func @_same_pad_kernel(%arg0: i32, %arg1: memref<2x16x16xf32, #tpu.memory_space<vmem>>, %arg2: memref<2x18x18xf32, #tpu.memory_space<vmem>>) attributes {dimension_semantics = [#tpu.dimension_semantics<parallel>], iteration_bounds = array<i64: 4>, scalar_prefetch = 0 : i64, scratch_operands = 0 : i64, tpu.core_type = #tpu.core_type<tc>, window_params = [{transform_indices = @transform_0, window_bounds = array<i64: 2, 16, 16>}, {transform_indices = @transform_1, window_bounds = array<i64: 2, 18, 18>}]} {
    %cst = arith.constant 0.000000e+00 : f32
    %0 = vector.broadcast %cst : f32 to vector<2x1x18xf32>
    %c0 = arith.constant 0 : index
    %c0_0 = arith.constant 0 : index
    %c0_1 = arith.constant 0 : index
    %1 = vector.load %arg2[%c0, %c0_0, %c0_1] : memref<2x18x18xf32, #tpu.memory_space<vmem>>, vector<2x1x18xf32>
    tpu.vector_store %arg2[%c0, %c0_0, %c0_1], %0 {strides = array<i32>} : memref<2x18x18xf32, #tpu.memory_space<vmem>>, vector<2x1x18xf32>,
    %cst_2 = arith.constant 0.000000e+00 : f32
    %2 = vector.broadcast %cst_2 : f32 to vector<2x1x18xf32>
    %c0_3 = arith.constant 0 : index
    %c17 = arith.constant 17 : index
    %c0_4 = arith.constant 0 : index
    %3 = vector.load %arg2[%c0_3, %c17, %c0_4] : memref<2x18x18xf32, #tpu.memory_space<vmem>>, vector<2x1x18xf32>
    tpu.vector_store %arg2[%c0_3, %c17, %c0_4], %2 {strides = array<i32>} : memref<2x18x18xf32, #tpu.memory_space<vmem>>, vector<2x1x18xf32>,
    %cst_5 = arith.constant 0.000000e+00 : f32
    %4 = vector.broadcast %cst_5 : f32 to vector<2x16x1xf32>
    %c0_6 = arith.constant 0 : index
    %c1 = arith.constant 1 : index
    %c0_7 = arith.constant 0 : index
    %5 = vector.load %arg2[%c0_6, %c1, %c0_7] : memref<2x18x18xf32, #tpu.memory_space<vmem>>, vector<2x16x1xf32>
    tpu.vector_store %arg2[%c0_6, %c1, %c0_7], %4 {strides = array<i32>} : memref<2x18x18xf32, #tpu.memory_space<vmem>>, vector<2x16x1xf32>,
    %cst_8 = arith.constant 0.000000e+00 : f32
    %6 = vector.broadcast %cst_8 : f32 to vector<2x16x1xf32>
    %c0_9 = arith.constant 0 : index
    %c1_10 = arith.constant 1 : index
    %c17_11 = arith.constant 17 : index
    %7 = vector.load %arg2[%c0_9, %c1_10, %c17_11] : memref<2x18x18xf32, #tpu.memory_space<vmem>>, vector<2x16x1xf32>
    tpu.vector_store %arg2[%c0_9, %c1_10, %c17_11], %6 {strides = array<i32>} : memref<2x18x18xf32, #tpu.memory_space<vmem>>, vector<2x16x1xf32>,
    %c0_12 = arith.constant 0 : index
    %c0_13 = arith.constant 0 : index
    %c0_14 = arith.constant 0 : index
    %8 = vector.load %arg1[%c0_12, %c0_13, %c0_14] : memref<2x16x16xf32, #tpu.memory_space<vmem>>, vector<2x16x16xf32>
    %c0_15 = arith.constant 0 : index
    %c1_16 = arith.constant 1 : index
    %c1_17 = arith.constant 1 : index
    %9 = vector.load %arg2[%c0_15, %c1_16, %c1_17] : memref<2x18x18xf32, #tpu.memory_space<vmem>>, vector<2x16x16xf32>
    tpu.vector_store %arg2[%c0_15, %c1_16, %c1_17], %8 {strides = array<i32>} : memref<2x18x18xf32, #tpu.memory_space<vmem>>, vector<2x16x16xf32>,
    return
  }
  func.func @transform_0(%arg0: i32) -> (i32, i32, i32) {
    %c0_i32 = arith.constant 0 : i32
    %c0_i32_0 = arith.constant 0 : i32
    %c0_i32_1 = arith.constant 0 : i32
    return %arg0, %c0_i32, %c0_i32_0 : i32, i32, i32
  }
  func.func @transform_1(%arg0: i32) -> (i32, i32, i32) {
    %c0_i32 = arith.constant 0 : i32
    %c0_i32_0 = arith.constant 0 : i32
    %c0_i32_1 = arith.constant 0 : i32
    return %arg0, %c0_i32, %c0_i32_0 : i32, i32, i32
  }
}

</mosaic_0001>

<bundles_post_ra>
// kernel: tpu_custom_call.1
= control target key start
LH: loop header
LB: loop body
LE: loop exit
PB: predicated region body
PF: predicated region fallthrough
CT: control target
= control target key end

     0   :  { %6 = vsyncpa [#allocation3], 0  ;;  %s502_s0 = inlined_call_operand.hbm [shape: f32[8,16,16], index: 0, kind: input, shape index: {}]   ;;  %s503_s1 = inlined_call_operand.vmem [shape: f32[8,18,18], index: 1, kind: output, shape index: {}]  }
   0x1   :  { %8 = vsyncpa [#allocation3 + $0x1], 0  ;;  %s390_s6 = smov 0   ;;  %s392_s7 = smov 0  }
   0x2   :  { %s394_s8 = smov 0   ;;  %s396_s9 = smov 0  }
   0x3 LB: > { %s251_s10 = sadd.s32 4294967295, %s373_s9   ;;  %s410_s11 = sadd.s32 1, %s373_s9   ;;  %s373_s9 = sphi %s396_s9, %s512_s9   ;;  %s369_s8 = sphi %s394_s8, %s511_s8   ;;  %s365_s7 = sphi %s392_s7, %s510_s7   ;;  %s361_s6 = sphi %s390_s6, %s509_s6  }
   0x4   : > { %s18_s12 = ssub.s32 %s373_s9, %s410_s11  ;;  %s21_s13 = sadd.s32 1, %s369_s8 }
   0x5   : > { %p19_p0 = scmp.eq.s32.totalorder %s18_s12, 0  ;;  %p28_p1 = scmp.ne.s32.totalorder %s369_s8, %s365_s7 }
   0x6   : > { %p29_p2 = scmp.eq.s32.totalorder %s373_s9, 0  ;;  %p34_p3 = scmp.ne.s32.totalorder %s365_s7, %s361_s6 }
   0x7   : > { %s420_s14 = scalar_select %p19_p0, %s369_s8, %s21_s13  }
   0x8   : > { %p30_p4 = por %p29_p2, %p28_p1  ;;  %p35_p5 = scmp.eq.s32.totalorder %s251_s10, 0 }
   0x9   : > { %p274_p6 = scmp.lt.s32.totalorder %s373_s9, 4  ;;  %s84_s16 = sand.u32 1, %s369_s8  }
   0xa   : > { %p425_p7 = por %p35_p5, %p34_p3  ;;  %s255_s17 = sshll.u32 %s84_s16, 5 }
   0xb   : > { %s266_s18 = sshll.u32 %s373_s9, 9  ;;  %s88_s22 = scalar_lea.vmem [#allocation2], %s255_s17 }
   0xc   : > { %s505_s15 = scalar_select %p425_p7, 1, 0 }
   0xd   : > { %s434_s21 = scalar_lea.hbm %s502_s0, %s266_s18  ;;  %s96_s23 = sshll.u32 %s88_s22, 4  ;;  %s436_s23 = int_to_ptr.vmem [resolvable:$true] %s96_s23 }
   0xe   : > { %p438_p8 = pnand %p274_p6, %p30_p4  ;;  %s443_s25 = scalar_lea.sflag [#allocation3], %s84_s16 }
   0xf   : > { %s311_s26 = scalar_lea.hbm %s434_s21, 512  ;;  %s316_s29 = scalar_lea.hbm %s502_s0, 2048 }
  0x10   : > { %p312_p10 = scmp.ne.s32.totalorder %s434_s21, %s311_s26  ;;  %p313_p11 = pneg %p438_p8 }
  0x11   : > { %p317_p0 = scmp.lt.s32.totalorder %s434_s21, %s502_s0  ;;  %p318_p1 = scmp.lt.s32.totalorder %s316_s29, %s311_s26 }
  0x12   : > { %p314_p12 = pnand %p313_p11, %p312_p10 }
  0x13   : > { %p319_p2 = por %p318_p1, %p317_p0 }
  0x14   : > { %p315_p13 = pneg %p314_p12 }
  0x16   : > { %p320_p3 = pnand %p319_p2, %p315_p13 }
  0x18   : > { %323 = shalt.err (!%p320_p3)
}
  0x19   : > { %s324_s3 = scalar_lea.vmem %s436_s23, 512  ;;  %s375_s4 = smov [#allocation2]  }
  0x1a   : > { %p325_p4 = scmp.ne.s32.totalorder %s436_s23, %s324_s3  ;;  %s329_s5 = sshll.u32 %s375_s4, 4  ;;  %s330_s5 = int_to_ptr.vmem [resolvable:$false] %s329_s5 }
  0x1b   : > { %s331_s6 = scalar_lea.vmem %s330_s5, 1024  ;;  %p332_p10 = scmp.lt.s32.totalorder %s436_s23, %s330_s5 }
  0x1c   : > { %p327_p5 = pnand %p325_p4, %p313_p11  ;;  %p333_p12 = scmp.lt.s32.totalorder %s331_s6, %s324_s3 }
  0x1e   : > { %p328_p6 = pneg %p327_p5  ;;  %p334_p9 = por %p333_p12, %p332_p10 }
  0x20   : > { %p335_p7 = pnand %p334_p9, %p328_p6 }
  0x22   : > { %338 = shalt.err (!%p335_p7)
}
  0x23   : > { %s376_s12 = smov 128   ;;  %s377_s13 = smov 8  }
  0x24   : > { %273 = dma.hbm_to_vmem [thread:$0]  (!%p438_p8), %s434_s21, 512, %s436_s23, %s443_s25, %s376_s12, %s376_s12, %s377_s13  }
  0x25   : > { %p104_p11 = scmp.lt.s32.totalorder %s373_s9, 5  ;;  %p507_p13 = scmp.ge.s32.totalorder %s373_s9, 1 }
  0x27   : > { %p105_p0 = pnand %p507_p13, %p104_p11 }
  0x28   : > { %s110_s16 = sand.u32 (!%p105_p0), 1, %s365_s7   ;;  %p508_p7 = scmp.ne.s32.totalorder (!%p105_p0), %s505_s15, 0 }
  0x29   : > { %108 = sbr.rel (%p105_p0) target bundleno = 169 (0xa9), region = 24  ;;  %s260_s17 = sshll.u32 (!%p105_p0), %s110_s16, 5 }
  0x2a   : > { %s111_s18 = scalar_lea.sflag (!%p105_p0), [#allocation3], %s110_s16  ;;  %s114_s19 = scalar_lea.vmem (!%p105_p0), [#allocation2], %s260_s17 }
  0x2e   : > { %356 = dma.done.wait (%p508_p7), %s111_s18, 512  }
  0x2f   : > { %358 = vsyncadd (%p508_p7), %s111_s18, 4294966784  ;;  %s261_s20 = sshll.u32 %s251_s10, 1  ;;  %vm142_vm0 = vcmask 139264   ;;  %vm147_vm1 = vcmask 7168   ;;  %v157_v0 = vld [vmem:[%s114_s19] sm:$0xff]  ;;  %v159_v1 = vld [vmem:[%s114_s19 + $0x10] sm:$0xff] }
  0x30   : > { %p136_p9 = scmp.lt.s32.totalorder %s261_s20, 7  ;;  %vm152_vm2 = vcmask 146568   ;;  %s378_s25 = smov 1   ;;  %v379_v2 = vmov 0.0   ;;  %v158_v3 = vld [vmem:[%s114_s19 + $0x8] sm:$0xff]  ;;  %v160_v4 = vld [vmem:[%s114_s19 + $0x18] sm:$0xff] }
  0x31   : > { %165 = vrot.lane.b32.xlu0 %v157_v0, %s378_s25  ;;  %169 = vrot.lane.b32.xlu1 %v159_v1, %s378_s25  ;;  %vm177_vm3 = vcmask 138248  }
  0x32   : > { %s514_s20 = smov (!%p136_p9, %s261_s20), 7 }
  0x33   : > { %s267_s21 = smul.u32 24, %s514_s20 }
  0x35   : > { %s140_s24 = scalar_lea.vmem %s503_s1, %s267_s21  ;;  %167 = vrot.lane.b32.xlu0 %v158_v3, %s378_s25  ;;  %171 = vrot.lane.b32.xlu1 %v160_v4, %s378_s25 }
  0x36   : > { %143 = vst.msk [vmem:[%s140_s24] sm:$0x1] %vm142_vm0, %v379_v2  ;;  %145 = vst.msk [vmem:[%s140_s24 + $0x11] sm:$0x1] %vm142_vm0, %v379_v2 }
  0x37   : > { %148 = vst.msk [vmem:[%s140_s24 + $0x1] sm:$0xff] %vm147_vm1, %v379_v2  ;;  %149 = vst.msk [vmem:[%s140_s24 + $0x9] sm:$0xff] %vm147_vm1, %v379_v2 }
  0x38   : > { %144 = vst.msk [vmem:[%s140_s24 + $0x18] sm:$0x1] %vm142_vm0, %v379_v2  ;;  %146 = vst.msk [vmem:[%s140_s24 + $0x29] sm:$0x1] %vm142_vm0, %v379_v2 }
  0x39   : > { %150 = vst.msk [vmem:[%s140_s24 + $0x19] sm:$0xff] %vm147_vm1, %v379_v2  ;;  %151 = vst.msk [vmem:[%s140_s24 + $0x21] sm:$0xff] %vm147_vm1, %v379_v2 }
  0x3a   : > { %153 = vst.msk [vmem:[%s140_s24 + $0x1] sm:$0xff] %vm152_vm2, %v379_v2  ;;  %154 = vst.msk [vmem:[%s140_s24 + $0x9] sm:$0xff] %vm152_vm2, %v379_v2 }
  0x3b   : > { %155 = vst.msk [vmem:[%s140_s24 + $0x19] sm:$0xff] %vm152_vm2, %v379_v2  ;;  %156 = vst.msk [vmem:[%s140_s24 + $0x21] sm:$0xff] %vm152_vm2, %v379_v2 }
  0xa3   : > { %v166_v5 = vpop.permute.xlu0 %165  ;;  %v170_v6 = vpop.permute.xlu1 %169 }
  0xa4   : > { %178 = vst.msk [vmem:[%s140_s24 + $0x1] sm:$0xff] %vm177_vm3, %v166_v5  ;;  %180 = vst.msk [vmem:[%s140_s24 + $0x19] sm:$0xff] %vm177_vm3, %v170_v6 }
  0xa7   : > { %v168_v7 = vpop.permute.xlu0 %167  ;;  %v172_v8 = vpop.permute.xlu1 %171 }
  0xa8   : > { %179 = vst.msk [vmem:[%s140_s24 + $0x9] sm:$0xff] %vm177_vm3, %v168_v7  ;;  %181 = vst.msk [vmem:[%s140_s24 + $0x21] sm:$0xff] %vm177_vm3, %v172_v8 }
  0xa9 PF: > { %p11_p8 = scmp.ge.s32.totalorder %s410_s11, 6   ;;  %s509_s6 = smov %s365_s7 }
  0xaa   : > { %s510_s7 = smov %s369_s8  ;;  %s511_s8 = smov %s420_s14 }
  0xab   : > { %s512_s9 = smov %s410_s11  ;;  %13 = sbr.rel (!%p11_p8) target bundleno = 3 (0x3), region = 64 }
  0xb0   :  { %206 = vsyncpa [#allocation3], 1 }
  0xb1   :  { %208 = vsyncpa [#allocation3 + $0x1], 1 }

</bundles_post_ra>
